<compile_context>
chip_gen: v7x
topology: tpu7x:2x2x1
jax: 0.10.0
libtpu: 0.0.40
codegen_flags: <defaults>
</compile_context>

<pallas_src>
import jax
import jax.numpy as jnp
from jax.experimental import pallas as pl
from jax.experimental.pallas import tpu as pltpu

_LANE = 128


def _round_up(n, m):
    return (n + m - 1) // m * m


def _mlp_kernel(x_ref, w1t_ref, b1_ref, w2t_ref, b2_ref, w3c_ref, b3c_ref, o_ref):
    # Transpose the activation tile once (XLU) so batch lives on lanes.
    # Keep the transpose in f32 (best-supported path), cast afterwards.
    xt = x_ref[...].T.astype(w1t_ref.dtype)                     # (D, TB)

    # fc1 + ReLU: (64, D) @ (D, TB) -> (64, TB), f32 accumulation on the MXU.
    h1 = jnp.dot(w1t_ref[...], xt, preferred_element_type=jnp.float32)
    h1 = jnp.maximum(h1 + b1_ref[...], 0.0)                     # b1: (64, 1)

    # fc2 + ReLU: (32, 64) @ (64, TB) -> (32, TB)
    h2 = jnp.dot(w2t_ref[...], h1.astype(w2t_ref.dtype),
                 preferred_element_type=jnp.float32)
    h2 = jnp.maximum(h2 + b2_ref[...], 0.0)                     # b2: (32, 1)

    # fc3 (32 -> 1): VPU multiply + XLU sublane-reduce (keeps the degenerate
    # N=1 matmul off the MXU).  w3c/b3c already carry the 0.5 sigmoid scale.
    half_logits = jnp.sum(h2 * w3c_ref[...], axis=0, keepdims=True) + b3c_ref[...]

    # sigmoid(z) = 0.5 * tanh(z / 2) + 0.5 -> single EUP op, lane-dense store.
    o_ref[...] = 0.5 * jnp.tanh(half_logits) + 0.5              # (1, TB)


def clients_mod_forward(x, params, *, block_b=2048, compute_dtype=jnp.float32):
    """x: (B, input_dim) float32; params: dict of (in,out) weights, (1,out) biases.

    Returns (B, 1) float32 sigmoid outputs (same semantics as clientsMod.forward).
    `compute_dtype=jnp.bfloat16` trades a little matmul precision for MXU rate.
    """
    B, D = x.shape
    block_b = _round_up(block_b, _LANE)

    # Batch tile selection.  No wrapper-side pad/cast of x: partial boundary
    # blocks handle B % tb != 0 (garbage rows are write-masked on the output).
    if B > block_b:
        tb = block_b                                   # multiple of 128
    elif B >= 2 * _LANE:
        # Keep >= 2 grid steps so v7x can shard them across its 2 TensorCores.
        tb = _round_up(pl.cdiv(B, 2), _LANE)
    else:
        tb = B                                         # single full-array block
    grid = (pl.cdiv(B, tb),)

    # Weight prep (tiny arrays; negligible wrapper cost).
    w1t = params["w1"].T.astype(compute_dtype)                     # (64, D)
    w2t = params["w2"].T.astype(compute_dtype)                     # (32, 64)
    b1 = params["b1"].reshape(-1, 1).astype(jnp.float32)           # (64, 1)
    b2 = params["b2"].reshape(-1, 1).astype(jnp.float32)           # (32, 1)
    # Fold the sigmoid 1/2 scale into fc3:  sigmoid(z) = 0.5*tanh(z/2) + 0.5.
    w3c = (0.5 * params["w3"]).reshape(-1, 1).astype(jnp.float32)  # (32, 1)
    b3c = (0.5 * params["b3"]).reshape(1, 1).astype(jnp.float32)   # (1, 1)

    resident = lambda a: pl.BlockSpec(a.shape, lambda i: (0, 0))

    out = pl.pallas_call(
        _mlp_kernel,
        out_shape=jax.ShapeDtypeStruct((1, B), jnp.float32),       # lane-dense row
        grid=grid,
        in_specs=[
            pl.BlockSpec((tb, D), lambda i: (i, 0)),   # one batch tile per step
            resident(w1t), resident(b1),               # weights/biases stay in VMEM
            resident(w2t), resident(b2),
            resident(w3c), resident(b3c),
        ],
        out_specs=pl.BlockSpec((1, tb), lambda i: (0, i)),
        compiler_params=pltpu.CompilerParams(
            dimension_semantics=("parallel",),         # v7x dual-TC sharding
        ),
    )(x, w1t, b1, w2t, b2, w3c, b3c)

    return out.reshape(B, 1)


def init_params(key, input_dim=36):
    """Deterministic init mimicking PyTorch Linear default (uniform +/- 1/sqrt(fan_in))."""
    dims = [(input_dim, 64), (64, 32), (32, 1)]
    params = {}
    for i, (fan_in, fan_out) in enumerate(dims, start=1):
        key, kw, kb = jax.random.split(key, 3)
        bound = 1.0 / jnp.sqrt(float(fan_in))
        params[f"w{i}"] = jax.random.uniform(
            kw, (fan_in, fan_out), jnp.float32, -bound, bound
        )
        params[f"b{i}"] = jax.random.uniform(
            kb, (1, fan_out), jnp.float32, -bound, bound
        )
    return params


def _reference_forward(x, params):
    h1 = jnp.maximum(x @ params["w1"] + params["b1"], 0.0)
    h2 = jnp.maximum(h1 @ params["w2"] + params["b2"], 0.0)
    return jax.nn.sigmoid(h2 @ params["w3"] + params["b3"])


if __name__ == "__main__":
    key = jax.random.PRNGKey(0)
    key, kx, kx2 = jax.random.split(key, 3)

    batch, input_dim = 8, 36
    x = jax.random.normal(kx, (batch, input_dim), dtype=jnp.float32)
    params = init_params(key, input_dim=input_dim)
    ref = _reference_forward(x, params)

    # Default f32 compute path.  Tolerance is modest because the kernel
    # evaluates (W @ x^T)^T, so MXU accumulation order differs from x @ W.
    out = jax.block_until_ready(clients_mod_forward(x, params))
    assert out.shape == (batch, 1)
    assert jnp.allclose(out, ref, atol=5e-3, rtol=5e-3)

    # bf16 compute path (MXU-native rate): relaxed tolerance.
    out_bf16 = jax.block_until_ready(
        clients_mod_forward(x, params, compute_dtype=jnp.bfloat16)
    )
    assert out_bf16.shape == (batch, 1)
    assert jnp.allclose(out_bf16, ref, atol=2e-2, rtol=2e-2)

    # Multi-step grid with a partial boundary block (no padding of x).
    xb = jax.random.normal(kx2, (300, input_dim), dtype=jnp.float32)
    refb = _reference_forward(xb, params)
    out_b = jax.block_until_ready(clients_mod_forward(xb, params))           # 2 steps
    assert out_b.shape == (300, 1)
    assert jnp.allclose(out_b, refb, atol=5e-3, rtol=5e-3)
    out_c = jax.block_until_ready(
        clients_mod_forward(xb, params, block_b=128)                          # 3 steps
    )
    assert jnp.allclose(out_c, refb, atol=5e-3, rtol=5e-3)

    print("KERNEL_OK")
</pallas_src>

<mosaic_0001>
module attributes {stable_mosaic.version = 11 : i64} {
  func.func @_mlp_kernel(%arg0: i32, %arg1: memref<8x36xf32, #tpu.memory_space<vmem>>, %arg2: memref<64x36xf32, #tpu.memory_space<vmem>>, %arg3: memref<64x1xf32, #tpu.memory_space<vmem>>, %arg4: memref<32x64xf32, #tpu.memory_space<vmem>>, %arg5: memref<32x1xf32, #tpu.memory_space<vmem>>, %arg6: memref<32x1xf32, #tpu.memory_space<vmem>>, %arg7: memref<1x1xf32, #tpu.memory_space<vmem>>, %arg8: memref<1x8xf32, #tpu.memory_space<vmem>>) attributes {dimension_semantics = [#tpu.dimension_semantics<parallel>], iteration_bounds = array<i64: 1>, scalar_prefetch = 0 : i64, scratch_operands = 0 : i64, tpu.core_type = #tpu.core_type<tc>, window_params = [{transform_indices = @transform_0, window_bounds = array<i64: 8, 36>}, {pipeline_mode = #tpu.pipeline_mode<synchronous>, transform_indices = @transform_1, window_bounds = array<i64: 64, 36>}, {pipeline_mode = #tpu.pipeline_mode<synchronous>, transform_indices = @transform_2, window_bounds = array<i64: 64, 1>}, {pipeline_mode = #tpu.pipeline_mode<synchronous>, transform_indices = @transform_3, window_bounds = array<i64: 32, 64>}, {pipeline_mode = #tpu.pipeline_mode<synchronous>, transform_indices = @transform_4, window_bounds = array<i64: 32, 1>}, {pipeline_mode = #tpu.pipeline_mode<synchronous>, transform_indices = @transform_5, window_bounds = array<i64: 32, 1>}, {pipeline_mode = #tpu.pipeline_mode<synchronous>, transform_indices = @transform_6, window_bounds = array<i64: 1, 1>}, {transform_indices = @transform_7, window_bounds = array<i64: 1, 8>}]} {
    %c0 = arith.constant 0 : index
    %c0_0 = arith.constant 0 : index
    %0 = vector.load %arg1[%c0, %c0_0] : memref<8x36xf32, #tpu.memory_space<vmem>>, vector<8x36xf32>
    %1 = tpu.transpose %0, [1, 0] : vector<8x36xf32> -> vector<36x8xf32>
    %c0_1 = arith.constant 0 : index
    %c0_2 = arith.constant 0 : index
    %2 = vector.load %arg2[%c0_1, %c0_2] : memref<64x36xf32, #tpu.memory_space<vmem>>, vector<64x36xf32>
    %cst = arith.constant dense<0.000000e+00> : vector<64x8xf32>
    %3 = tpu.matmul %2, %1, %cst {dimension_numbers = #tpu.dot_dimension_numbers<[1], [0], [0], [1], [0, 0, 1, 1], [], []>} : vector<64x36xf32>, vector<36x8xf32>, vector<64x8xf32> -> vector<64x8xf32>
    %c0_3 = arith.constant 0 : index
    %c0_4 = arith.constant 0 : index
    %4 = vector.load %arg3[%c0_3, %c0_4] : memref<64x1xf32, #tpu.memory_space<vmem>>, vector<64x1xf32>
    %5 = vector.broadcast %4 : vector<64x1xf32> to vector<64x8xf32>
    %6 = arith.addf %3, %5 : vector<64x8xf32>
    %cst_5 = arith.constant 0.000000e+00 : f32
    %7 = vector.broadcast %cst_5 : f32 to vector<64x8xf32>
    %8 = arith.maximumf %6, %7 : vector<64x8xf32>
    %c0_6 = arith.constant 0 : index
    %c0_7 = arith.constant 0 : index
    %9 = vector.load %arg4[%c0_6, %c0_7] : memref<32x64xf32, #tpu.memory_space<vmem>>, vector<32x64xf32>
    %cst_8 = arith.constant dense<0.000000e+00> : vector<32x8xf32>
    %10 = tpu.matmul %9, %8, %cst_8 {dimension_numbers = #tpu.dot_dimension_numbers<[1], [0], [0], [1], [0, 0, 1, 1], [], []>} : vector<32x64xf32>, vector<64x8xf32>, vector<32x8xf32> -> vector<32x8xf32>
    %c0_9 = arith.constant 0 : index
    %c0_10 = arith.constant 0 : index
    %11 = vector.load %arg5[%c0_9, %c0_10] : memref<32x1xf32, #tpu.memory_space<vmem>>, vector<32x1xf32>
    %12 = vector.broadcast %11 : vector<32x1xf32> to vector<32x8xf32>
    %13 = arith.addf %10, %12 : vector<32x8xf32>
    %cst_11 = arith.constant 0.000000e+00 : f32
    %14 = vector.broadcast %cst_11 : f32 to vector<32x8xf32>
    %15 = arith.maximumf %13, %14 : vector<32x8xf32>
    %c0_12 = arith.constant 0 : index
    %c0_13 = arith.constant 0 : index
    %16 = vector.load %arg6[%c0_12, %c0_13] : memref<32x1xf32, #tpu.memory_space<vmem>>, vector<32x1xf32>
    %17 = vector.broadcast %16 : vector<32x1xf32> to vector<32x8xf32>
    %18 = arith.mulf %15, %17 : vector<32x8xf32>
    %cst_14 = arith.constant dense<0.000000e+00> : vector<8xf32>
    %19 = vector.multi_reduction <add>, %18, %cst_14 [0] : vector<32x8xf32> to vector<8xf32>
    %20 = vector.shape_cast %19 : vector<8xf32> to vector<1x8xf32>
    %c0_15 = arith.constant 0 : index
    %c0_16 = arith.constant 0 : index
    %21 = vector.load %arg7[%c0_15, %c0_16] : memref<1x1xf32, #tpu.memory_space<vmem>>, vector<1x1xf32>
    %22 = vector.broadcast %21 : vector<1x1xf32> to vector<1x8xf32>
    %23 = arith.addf %20, %22 : vector<1x8xf32>
    %24 = math.tanh %23 : vector<1x8xf32>
    %cst_17 = arith.constant 5.000000e-01 : f32
    %25 = vector.broadcast %cst_17 : f32 to vector<1x8xf32>
    %26 = arith.mulf %25, %24 : vector<1x8xf32>
    %cst_18 = arith.constant 5.000000e-01 : f32
    %27 = vector.broadcast %cst_18 : f32 to vector<1x8xf32>
    %28 = arith.addf %26, %27 : vector<1x8xf32>
    %c0_19 = arith.constant 0 : index
    %c0_20 = arith.constant 0 : index
    %29 = vector.load %arg8[%c0_19, %c0_20] : memref<1x8xf32, #tpu.memory_space<vmem>>, vector<1x8xf32>
    tpu.vector_store %arg8[%c0_19, %c0_20], %28 {strides = array<i32>} : memref<1x8xf32, #tpu.memory_space<vmem>>, vector<1x8xf32>,
    return
  }
  func.func @transform_0(%arg0: i32) -> (i32, i32) {
    %c0_i32 = arith.constant 0 : i32
    %c0_i32_0 = arith.constant 0 : i32
    return %arg0, %c0_i32 : i32, i32
  }
  func.func @transform_1(%arg0: i32) -> (i32, i32) {
    %c0_i32 = arith.constant 0 : i32
    %c0_i32_0 = arith.constant 0 : i32
    %c0_i32_1 = arith.constant 0 : i32
    return %c0_i32, %c0_i32_0 : i32, i32
  }
  func.func @transform_2(%arg0: i32) -> (i32, i32) {
    %c0_i32 = arith.constant 0 : i32
    %c0_i32_0 = arith.constant 0 : i32
    %c0_i32_1 = arith.constant 0 : i32
    return %c0_i32, %c0_i32_0 : i32, i32
  }
  func.func @transform_3(%arg0: i32) -> (i32, i32) {
    %c0_i32 = arith.constant 0 : i32
    %c0_i32_0 = arith.constant 0 : i32
    %c0_i32_1 = arith.constant 0 : i32
    return %c0_i32, %c0_i32_0 : i32, i32
  }
  func.func @transform_4(%arg0: i32) -> (i32, i32) {
    %c0_i32 = arith.constant 0 : i32
    %c0_i32_0 = arith.constant 0 : i32
    %c0_i32_1 = arith.constant 0 : i32
    return %c0_i32, %c0_i32_0 : i32, i32
  }
  func.func @transform_5(%arg0: i32) -> (i32, i32) {
    %c0_i32 = arith.constant 0 : i32
    %c0_i32_0 = arith.constant 0 : i32
    %c0_i32_1 = arith.constant 0 : i32
    return %c0_i32, %c0_i32_0 : i32, i32
  }
  func.func @transform_6(%arg0: i32) -> (i32, i32) {
    %c0_i32 = arith.constant 0 : i32
    %c0_i32_0 = arith.constant 0 : i32
    %c0_i32_1 = arith.constant 0 : i32
    return %c0_i32, %c0_i32_0 : i32, i32
  }
  func.func @transform_7(%arg0: i32) -> (i32, i32) {
    %c0_i32 = arith.constant 0 : i32
    %c0_i32_0 = arith.constant 0 : i32
    return %c0_i32, %arg0 : i32, i32
  }
}

</mosaic_0001>

<bundles_post_ra>
// kernel: tpu_custom_call.1
= control target key start
LH: loop header
LB: loop body
LE: loop exit
PB: predicated region body
PF: predicated region fallthrough
CT: control target
= control target key end

     0   :  { %s707_s0 = inlined_call_operand.vmem [shape: f32[8,36], index: 0, kind: input, shape index: {}]   ;;  %s708_s1 = inlined_call_operand.vmem [shape: f32[64,36], index: 1, kind: input, shape index: {}]   ;;  %s709_s2 = inlined_call_operand.vmem [shape: f32[64,1], index: 2, kind: input, shape index: {}]   ;;  %s710_s3 = inlined_call_operand.vmem [shape: f32[32,64], index: 3, kind: input, shape index: {}]   ;;  %s711_s4 = inlined_call_operand.vmem [shape: f32[32,1], index: 4, kind: input, shape index: {}]   ;;  %s712_s5 = inlined_call_operand.vmem [shape: f32[32,1], index: 5, kind: input, shape index: {}]   ;;  %s713_s6 = inlined_call_operand.<no memory space> [shape: f32[1,1], index: 6, kind: input, shape index: {}]   ;;  %s714_s7 = inlined_call_operand.hbm [shape: f32[1,8], index: 7, kind: output, shape index: {}]  }
   0x1   :  { %v12_v0 = vstv %s713_s6 }
   0x2   :  { %13 = vst [vmem:[#allocation2] sm:$0x1] %v12_v0 }
   0x3   :  { %v29_v1 = vld [vmem:[%s707_s0] sm:$0xff]  ;;  %vm86_vm0 = vcmask 293888   ;;  %v31_v3 = vld [vmem:[%s708_s1 + $0x8] sm:$0xff]  ;;  %v545_v4 = vmov 0   ;;  %v32_v5 = vld [vmem:[%s708_s1 + $0x10] sm:$0xff] }
   0x4   :  { %v30_v2 = vld [vmem:[%s708_s1] sm:$0xff]  ;;  %463 = vmatprep.subr.msk.mxu0 %vm86_vm0, %v29_v1  ;;  %517 = vset.pattern.permute.xlu0 %v545_v4  ;;  %v40_v7 = vld [vmem:[%s709_s2 + $0x10] sm:$0xff]  ;;  %v39_v8 = vld [vmem:[%s709_s2 + $0x8] sm:$0xff] }
   0x5   :  { %465 = vmatprep.mubr.msk.f32.mxu0 %vm86_vm0, %v30_v2  ;;  %464 = vmatpush3.xpose.msk.msra.mxu0 %vm86_vm0, %v29_v1  ;;  %v38_v6 = vld [vmem:[%s709_s2] sm:$0xff]  ;;  %v41_v9 = vld [vmem:[%s709_s2 + $0x18] sm:$0xff] }
   0x6   :  { %518 = vset.pattern.permute.xlu1 %v545_v4  ;;  %48 = vperm.xlu0 %517, %v38_v6   ;;  %v33_v10 = vld [vmem:[%s708_s1 + $0x18] sm:$0xff]  ;;  %v34_v11 = vld [vmem:[%s708_s1 + $0x20] sm:$0xff] }
   0x7   :  { %58 = vperm.xlu1 %518, %v40_v7  }
   0x8   :  { %466 = vmatmul.mubr.msk.f32.vlgmr.msra.gmra.mrb[0].mxu0 %vm86_vm0, %v31_v3 }
   0x9   :  { %468 = vmatprep.mubr.msk.f32.mxu0 %vm86_vm0, %v32_v5 }
   0xa   :  { %53 = vperm.xlu0 %517, %v39_v8  }
   0xb   :  { %63 = vperm.xlu1 %518, %v41_v9  }
   0xc   :  { %14 = vsyncpa [#allocation4], 0  ;;  %469 = vmatmul.mubr.msk.f32.gmra.mrb[2].mxu0 %vm86_vm0, %v33_v10  ;;  %v42_v12 = vld [vmem:[%s709_s2 + $0x20] sm:$0xff]  ;;  %v43_v13 = vld [vmem:[%s709_s2 + $0x28] sm:$0xff]  ;;  %vm255_vm1 = vcmask 523264   ;;  %vm385_vm2 = vcmask 64512  }
   0xd   :  { %471 = vmatprep.mubr.msk.f32.mxu0 %vm86_vm0, %v34_v11  ;;  %v35_v14 = vld [vmem:[%s708_s1 + $0x28] sm:$0xff]  ;;  %v36_v15 = vld [vmem:[%s708_s1 + $0x30] sm:$0xff]  ;;  %v45_v17 = vld [vmem:[%s709_s2 + $0x38] sm:$0xff]  ;;  %vm413_vm3 = vcmask 57344  }
   0xe   :  { %68 = vperm.xlu0 %517, %v42_v12   ;;  %v44_v16 = vld [vmem:[%s709_s2 + $0x30] sm:$0xff]  ;;  %v37_v18 = vld [vmem:[%s708_s1 + $0x38] sm:$0xff]  ;;  %v231_v19 = vld [vmem:[%s711_s4] sm:$0xff] }
   0xf   :  { %73 = vperm.xlu1 %518, %v43_v13   ;;  %v232_v20 = vld [vmem:[%s711_s4 + $0x8] sm:$0xff]  ;;  %v233_v21 = vld [vmem:[%s711_s4 + $0x10] sm:$0xff]  ;;  %v234_v22 = vld [vmem:[%s711_s4 + $0x18] sm:$0xff] }
  0x10   :  { %472 = vmatmul.mubr.msk.f32.gmra.mrb[4].mxu0 %vm86_vm0, %v35_v14  ;;  %v357_v23 = vld [vmem:[%s712_s5] sm:$0xff]  ;;  %v358_v24 = vld [vmem:[%s712_s5 + $0x8] sm:$0xff]  ;;  %v359_v25 = vld [vmem:[%s712_s5 + $0x10] sm:$0xff] }
  0x11   :  { %474 = vmatprep.mubr.msk.f32.mxu0 %vm86_vm0, %v36_v15  ;;  %v360_v26 = vld [vmem:[%s712_s5 + $0x18] sm:$0xff]  ;;  %v399_v27 = vld [vmem:[#allocation2] sm:$0x1]  ;;  %v228_v1 = vld [vmem:[%s710_s3 + $0x8] sm:$0xff] }
  0x12   :  { %78 = vperm.xlu0 %517, %v44_v16   ;;  %v227_v28 = vld [vmem:[%s710_s3] sm:$0xff]  ;;  %v229_v2 = vld [vmem:[%s710_s3 + $0x10] sm:$0xff]  ;;  %v230_v3 = vld [vmem:[%s710_s3 + $0x18] sm:$0xff]  ;;  %s546_s3 = smov [#allocation3]  }
  0x13   :  { %83 = vperm.xlu1 %518, %v45_v17   ;;  %493 = vmatprep.mubr.msk.f32.mxu1 %vm255_vm1, %v227_v28  ;;  %s421_s30 = sshll.u32 %s546_s3, 4  ;;  %s422_s30 = int_to_ptr.vmem [resolvable:$true] %s421_s30 }
  0x14   :  { %475 = vmatmul.mubr.msk.f32.gmra.mrb[6].mxu0 %vm86_vm0, %v37_v18  ;;  %s521_s8 = scalar_lea.vmem %s422_s30, 16  ;;  %s525_s6 = scalar_lea.vmem %s422_s30, 32 }
  0x15   :  { %p522_p0 = scmp.ne.s32.totalorder %s422_s30, %s521_s8  ;;  %p526_p1 = scmp.lt.s32.totalorder %s422_s30, %s422_s30 }
  0x16   :  { %237 = vperm.xlu0 %517, %v231_v19   ;;  %p527_p2 = scmp.lt.s32.totalorder %s525_s6, %s521_s8 }
  0x17   :  { %242 = vperm.xlu1 %518, %v232_v20  }
  0x18   :  { %p528_p3 = por %p527_p2, %p526_p1 }
  0x1a   :  { %247 = vperm.xlu0 %517, %v233_v21   ;;  %p529_p4 = pnand %p528_p3, %p522_p0 }
  0x1b   :  { %252 = vperm.xlu1 %518, %v234_v22  }
  0x1e   :  { %363 = vperm.xlu0 %517, %v357_v23  }
  0x1f   :  { %368 = vperm.xlu1 %518, %v358_v24  }
  0x22   :  { %373 = vperm.xlu0 %517, %v359_v25  }
  0x23   :  { %378 = vperm.xlu1 %518, %v360_v26  }
  0x26   :  { %402 = vperm.xlu0 %517, %v399_v27  }
  0x85   :  { %v49_v29 = vpop.permute.xlu0 %48 }
  0x86   :  { %v59_v30 = vpop.permute.xlu1 %58 }
  0x89   :  { %v54_v31 = vpop.permute.xlu0 %53 }
  0x8a   :  { %v64_v32 = vpop.permute.xlu1 %63 }
  0x8d   :  { %v69_v45 = vpop.permute.xlu0 %68 }
  0x8e   :  { %v74_v42 = vpop.permute.xlu1 %73 }
  0x91   :  { %v79_v57 = vpop.permute.xlu0 %78 }
  0x92   :  { %v84_v54 = vpop.permute.xlu1 %83 }
  0x95   :  { %v238_v4 = vpop.permute.xlu0 %237 }
  0x96   :  { %v243_v5 = vpop.permute.xlu1 %242 }
  0x99   :  { %v248_v6 = vpop.permute.xlu0 %247 }
  0x9a   :  { %v253_v7 = vpop.permute.xlu1 %252 }
  0x9d   :  { %v364_v12 = vpop.permute.xlu0 %363 }
  0x9e   :  { %v369_v13 = vpop.permute.xlu1 %368 }
  0xa1   :  { %v374_v26 = vpop.permute.xlu0 %373 }
  0xa2   :  { %v379_v27 = vpop.permute.xlu1 %378 }
  0xdb   :  { %v467_v33 = vpop.f32.mrb[0].mxu0 }
  0xdc   :  { %v186_v34 = vadd.f32 %v467_v33, %v54_v31  ;;  %v180_v35 = vpop.f32.mrb[1].mxu0 }
  0xdd   :  { %v181_v36 = vadd.f32 %v180_v35, %v49_v29 }
  0xde   :  { %v220_v37 = vmax.f32 %v186_v34, 0.0  ;;  %v405_v34 = vlaneseq }
  0xdf   :  { %v219_v38 = vmax.f32 %v181_v36, 0.0  ;;  %v470_v39 = vpop.f32.mrb[2].mxu0 }
  0xe0   :  { %v196_v40 = vadd.f32 %v470_v39, %v64_v32  ;;  %v190_v41 = vpop.f32.mrb[3].mxu0 }
  0xe1   :  { %v191_v43 = vadd.f32 %v190_v41, %v59_v30  ;;  %v499_v44 = vpack.c.bf16 %v220_v37, %v219_v38  ;;  %v406_v37 = vshrl.u32 %v405_v34, 7 }
  0xe2   :  { %v222_v46 = vmax.f32 %v196_v40, 0.0 }
  0xe3   :  { %v221_v47 = vmax.f32 %v191_v43, 0.0  ;;  %v473_v48 = vpop.f32.mrb[4].mxu0  ;;  %500 = vmatprep.subr.bf16.mxu1 %v499_v44  ;;  %v407_v40 = vsub.s32 0, %v406_v37 }
  0xe4   :  { %v206_v49 = vadd.f32 %v473_v48, %v74_v42  ;;  %v200_v50 = vpop.f32.mrb[5].mxu0  ;;  %502 = vmatpush3.bf16.msra.mxu1 %v499_v44  ;;  %v403_v42 = vpop.permute.xlu0 %402 }
  0xe5   :  { %v503_v51 = vpack.c.bf16 %v222_v46, %v221_v47  ;;  %v201_v52 = vadd.f32 %v200_v50, %v69_v45  ;;  %v408_v44 = vrot.slane %v403_v42, %v407_v40 }
  0xe6   :  { %v224_v53 = vmax.f32 %v206_v49, 0.0 }
  0xe7   :  { %v223_v55 = vmax.f32 %v201_v52, 0.0  ;;  %v476_v56 = vpop.f32.mrb[6].mxu0  ;;  %504 = vmatprep.subr.bf16.mxu1 %v503_v51 }
  0xe8   :  { %v216_v58 = vadd.f32 %v476_v56, %v84_v54  ;;  %v210_v59 = vpop.f32.mrb[7].mxu0  ;;  %506 = vmatpush3.bf16.msra.mxu1 %v503_v51 }
  0xe9   :  { %v507_v60 = vpack.c.bf16 %v224_v53, %v223_v55  ;;  %v211_v61 = vadd.f32 %v210_v59, %v79_v57 }
  0xea   :  { %v226_v62 = vmax.f32 %v216_v58, 0.0 }
  0xeb   :  { %v225_v63 = vmax.f32 %v211_v61, 0.0  ;;  %508 = vmatprep.subr.bf16.mxu1 %v507_v60 }
  0xec   :  { %510 = vmatpush3.bf16.msra.mxu1 %v507_v60 }
  0xed   :  { %v511_v0 = vpack.c.bf16 %v226_v62, %v225_v63 }
  0xef   :  { %512 = vmatprep.subr.bf16.mxu1 %v511_v0 }
  0xf0   :  { %514 = vmatpush3.bf16.msra.mxu1 %v511_v0 }
  0xf3   :  { %494 = vmatmul.mubr.msk.f32.vlgmr.msra.gmra.mrb[0].mxu1 %vm255_vm1, %v228_v1 }
  0xf4   :  { %496 = vmatprep.mubr.msk.f32.mxu1 %vm255_vm1, %v229_v2 }
  0xf7   :  { %497 = vmatmul.mubr.msk.f32.gmra.mrb[2].mxu1 %vm255_vm1, %v230_v3 }
 0x1c6   :  { %v495_v8 = vpop.f32.mrb[0].mxu1 }
 0x1c7   :  { %v340_v9 = vadd.f32 %v495_v8, %v243_v5  ;;  %v334_v10 = vpop.f32.mrb[1].mxu1 }
 0x1c8   :  { %v335_v11 = vadd.f32 %v334_v10, %v238_v4 }
 0x1c9   :  { %v354_v14 = vmax.f32 %v340_v9, 0.0 }
 0x1ca   :  { %v353_v15 = vmax.f32 %v335_v11, 0.0  ;;  %v498_v16 = vpop.f32.mrb[2].mxu1 }
 0x1cb   :  { %v382_v17 = vmul.f32 %v369_v13, %v354_v14  ;;  %v350_v18 = vadd.f32 %v498_v16, %v253_v7  ;;  %v344_v19 = vpop.f32.mrb[3].mxu1 }
 0x1cc   :  { %v381_v20 = vmul.f32 %v364_v12, %v353_v15  ;;  %v345_v21 = vadd.f32 %v344_v19, %v248_v6 }
 0x1cd   :  { %v387_v22 = vsel %vm385_vm2, %v382_v17, 0.0  ;;  %v356_v23 = vmax.f32 %v350_v18, 0.0 }
 0x1ce   :  { %v386_v24 = vsel %vm385_vm2, %v381_v20, 0.0  ;;  %v355_v25 = vmax.f32 %v345_v21, 0.0 }
 0x1cf   :  { %v388_v28 = vadd.f32 %v387_v22, %v386_v24  ;;  %v384_v29 = vmul.f32 %v379_v27, %v356_v23 }
 0x1d0   :  { %v383_v30 = vmul.f32 %v374_v26, %v355_v25 }
 0x1d1   :  { %v391_v33 = vsel %vm385_vm2, %v384_v29, 0.0 }
 0x1d2   :  { %v389_v31 = vsel %vm385_vm2, %v383_v30, 0.0 }
 0x1d3   :  { %v390_v32 = vadd.f32 %v389_v31, %v388_v28 }
 0x1d5   :  { %v392_v35 = vadd.f32 %v391_v33, %v390_v32 }
 0x1d7   :  { %v393_v36 = vrot.slane %v392_v35, 4 }
 0x1d9   :  { %v394_v38 = vadd.f32 %v393_v36, %v392_v35 }
 0x1db   :  { %v395_v39 = vrot.slane %v394_v38, 2 }
 0x1dd   :  { %v396_v41 = vadd.f32 %v395_v39, %v394_v38 }
 0x1df   :  { %v397_v43 = vrot.slane %v396_v41, 1 }
 0x1e1   :  { %v398_v45 = vadd.f32 %v397_v43, %v396_v41 }
 0x1e3   :  { %v409_v46 = vadd.f32 %v408_v44, %v398_v45 }
 0x1e5   :  { %519 = vtanh.f32 %v409_v46 }
 0x1ef   :  { %v520_v47 = vpop.eup %519 }
 0x1f0   :  { %v411_v48 = vmul.f32 0.5, %v520_v47 }
 0x1f2   :  { %v412_v49 = vadd.f32 0.5, %v411_v48 }
 0x1f4   :  { %414 = vst.msk [vmem:[#allocation3] sm:$0x1] %vm413_vm3, %v412_v49 }
 0x1f5   :  { %532 = shalt.err (!%p529_p4)
}
 0x1f6   :  { %s533_s10 = scalar_lea.hbm %s714_s7, 16 }
 0x1f7   :  { %p534_p5 = scmp.ne.s32.totalorder %s714_s7, %s533_s10  ;;  %p537_p6 = scmp.lt.u32.totalorder %s533_s10, %s714_s7 }
 0x1f9   :  { %p539_p7 = pnand %p537_p6, %p534_p5 }
 0x1fb   :  { %542 = shalt.err (!%p539_p7)
}
 0x1fc   :  { %424 = dma.vmem_to_hbm [thread:$0]  %s422_s30, 16, %s714_s7, [#allocation4]  }
 0x1fd   :  { %543 = dma.done.wait [#allocation4], 16  }
 0x1fe   :  { %544 = vsyncadd [#allocation4], 4294967280 }
 0x1ff   :  { %428 = vsyncpa [#allocation4], 1 }

</bundles_post_ra>
